<compile_context>
chip_gen: v7x
topology: tpu7x:2x2x1
jax: 0.10.0
libtpu: 0.0.40
codegen_flags: <defaults>
</compile_context>

<pallas_src>
import jax
import jax.numpy as jnp
from jax.experimental import pallas as pl
from jax.experimental.pallas import tpu as pltpu


def _make_sd_head_kernel(n_total, tb, tn, d, inv_n):
    """Kernel body for static (N, TB, TN, D) and 1/N scale."""
    tail = n_total % tn          # valid rows in the last N tile (0 => even)
    sub = tn // 8                # TN is always a multiple of 8

    def kernel(x_ref, w_ref, b_ref, o_ref, acc_ref):
        # x_ref:   [TB, TN, 1024]  current input tile (f32 or bf16)
        # w_ref:   [1024, Kp]      fc weight (transposed, K padded), f32, VMEM-resident
        # b_ref:   [1, Kp]         fc bias (padded cols = -1e30), f32, VMEM-resident
        # o_ref:   [TB, Kp]        output block
        # acc_ref: [TB, 8, 1024]   f32 sublane-shaped running sum over N
        ni = pl.program_id(1)
        n_last = pl.num_programs(1) - 1

        @pl.when(ni == 0)
        def _init():
            acc_ref[...] = jnp.zeros_like(acc_ref)

        x = x_ref[...]

        def accumulate(xv):
            # (TB, TN, D) -> (TB, TN//8, 8, D), sum over axis=1: pure VPU adds
            # that keep the 8-sublane shape; the cross-sublane reduce is
            # deferred to the finalize step.
            acc_ref[...] += jnp.sum(
                xv.reshape(tb, sub, 8, d), axis=1, dtype=jnp.float32)

        if tail == 0:
            accumulate(x)
        else:
            @pl.when(ni != n_last)
            def _acc_full():
                accumulate(x)

            @pl.when(ni == n_last)
            def _acc_tail():
                # Mask the padded rows of the final (partial / clamped) tile.
                # jnp.where is a select, so garbage (even NaN/Inf) is safe.
                row = jax.lax.broadcasted_iota(jnp.int32, x.shape, 1)
                accumulate(jnp.where(row < tail, x, jnp.zeros_like(x)))

        @pl.when(ni == n_last)
        def _finalize():
            feat = jnp.sum(acc_ref[...], axis=1) * jnp.float32(inv_n)   # [TB, 1024]
            logits = jnp.dot(feat, w_ref[...],
                             preferred_element_type=jnp.float32)        # [TB, Kp]
            logits = logits + b_ref[...]                                # padded -> ~-1e30
            m = jnp.max(logits, axis=-1, keepdims=True)
            z = logits - m
            lse = jnp.log(jnp.sum(jnp.exp(z), axis=-1, keepdims=True))
            o_ref[...] = (z - lse).astype(o_ref.dtype)

    return kernel


def sd_net_forward(sd_outs, fc_weight, fc_bias, *, max_tn=None, compute_dtype=None):
    """sd_outs: [B, C, H, W] (NCHW UNet output); fc_weight: [K, 1024] (torch
    nn.Linear layout); fc_bias: [K].  Returns log_softmax logits [B, K].
    compute_dtype (e.g. jnp.bfloat16) casts the streamed input at the kernel
    boundary; accumulation / matmul / softmax stay f32."""
    B, C, H, W = sd_outs.shape
    D = 1024
    total = C * H * W
    assert total % D == 0, "C*H*W must be a multiple of 1024"
    N = total // D
    K = fc_weight.shape[0]
    Kp = ((K + 127) // 128) * 128          # lane-dense output / weight width

    x = sd_outs.reshape(B, N, D)           # glue reshape (plain JAX)
    if compute_dtype is not None:
        x = x.astype(compute_dtype)
    itemsize = jnp.dtype(x.dtype).itemsize

    # Pad weight (zeros) and bias (-1e30 so padded logits vanish in softmax).
    w_t = jnp.pad(fc_weight.T.astype(jnp.float32), ((0, 0), (0, Kp - K)))
    b_p = jnp.pad(fc_bias.astype(jnp.float32).reshape(1, K),
                  ((0, 0), (0, Kp - K)), constant_values=-1e30)

    # Batch tile: 8 (sublane-friendly); smaller batches use the full extent.
    # The last B block may be a clamped partial edge block (handled by Pallas).
    TB = 8 if B >= 8 else B

    # Dtype-aware sublane packing for the N tile: 8 (f32) / 16 (bf16) / 32 (int8).
    pack = 8 * max(1, 4 // itemsize)

    # N tile: ~8 MiB per (double-buffered) input block — amortizes the ~0.35 us
    # per-step overhead on v6e/v7x while staying comfortably inside v5e budgets.
    budget_bytes = 8 * 1024 * 1024
    tn = max(pack, (budget_bytes // (TB * D * itemsize)) // pack * pack)
    if max_tn is not None:
        tn = max(pack, (min(tn, max_tn) // pack) * pack)
    n_ceil = ((N + pack - 1) // pack) * pack
    TN = min(tn, n_ceil)                   # always a multiple of `pack`
    nb_b = pl.cdiv(B, TB)
    nb_n = pl.cdiv(N, TN)

    # VMEM limit derived from actual usage (+ slack for Mosaic internals).
    x_blk = TB * TN * D * itemsize
    vmem_limit = int(2 * x_blk                 # double-buffered x
                     + D * Kp * 4 + Kp * 4     # resident W, b (single copy)
                     + 2 * TB * Kp * 4         # double-buffered output block
                     + TB * 8 * D * 4          # accumulator scratch
                     + 8 * 1024 * 1024)        # slack

    kernel = _make_sd_head_kernel(N, TB, TN, D, 1.0 / N)

    out = pl.pallas_call(
        kernel,
        out_shape=jax.ShapeDtypeStruct((B, Kp), jnp.float32),
        grid=(nb_b, nb_n),
        in_specs=[
            pl.BlockSpec((TB, TN, D), lambda bi, ni: (bi, ni, 0)),
            # Constant operands: whole-array VMEM residents (no double buffer).
            pl.BlockSpec(memory_space=pltpu.MemorySpace.VMEM),
            pl.BlockSpec(memory_space=pltpu.MemorySpace.VMEM),
        ],
        out_specs=pl.BlockSpec((TB, Kp), lambda bi, ni: (bi, 0)),
        scratch_shapes=[pltpu.VMEM((TB, 8, D), jnp.float32)],
        compiler_params=pltpu.CompilerParams(
            dimension_semantics=("parallel", "arbitrary"),
            vmem_limit_bytes=vmem_limit,
        ),
    )(x, w_t, b_p)

    return out[:, :K]


def _reference(sd_outs, fc_weight, fc_bias):
    B = sd_outs.shape[0]
    x = sd_outs.reshape(B, -1, 1024).astype(jnp.float32)
    feat = jnp.mean(x, axis=1)
    logits = feat @ fc_weight.T.astype(jnp.float32) + fc_bias.astype(jnp.float32)
    return jax.nn.log_softmax(logits, axis=-1)


if __name__ == "__main__":
    key = jax.random.PRNGKey(0)
    k_x, k_w, k_b, k_x2 = jax.random.split(key, 4)

    # Small shapes consistent with the module:
    #   UNet latent output: [B=2, C=4, H=48, W=64] -> reshape [2, 12, 1024]
    #   pc_num_category (K) = 40
    B, C, H, W = 2, 4, 48, 64
    K = 40
    sd_outs = jax.random.normal(k_x, (B, C, H, W), dtype=jnp.float32)

    # Deterministic nn.Linear(1024, K) init (uniform +-1/sqrt(in_features)).
    bound = 1.0 / jnp.sqrt(1024.0)
    fc_weight = jax.random.uniform(k_w, (K, 1024), minval=-bound, maxval=bound,
                                   dtype=jnp.float32)
    fc_bias = jax.random.uniform(k_b, (K,), minval=-bound, maxval=bound,
                                 dtype=jnp.float32)

    ref = _reference(sd_outs, fc_weight, fc_bias)

    # 1) Default tiling: single N step with a masked tail (N=12 < pack-rounded 16).
    out = jax.block_until_ready(sd_net_forward(sd_outs, fc_weight, fc_bias))
    assert out.shape == (B, K)
    assert jnp.allclose(out, ref, atol=1e-4, rtol=1e-4), "mismatch vs reference"

    # 2) Forced small N tile: multi-step pipelined reduction, accumulator
    #    init/finalize and the masked tail tile (N=12, TN=8).
    out_tiled = jax.block_until_ready(
        sd_net_forward(sd_outs, fc_weight, fc_bias, max_tn=8))
    assert jnp.allclose(out_tiled, ref, atol=1e-4, rtol=1e-4), \
        "mismatch vs reference (tiled reduction)"

    # 3) bf16 streaming path (halves HBM traffic; f32 accumulation in-kernel),
    #    compared against the reference evaluated on the same bf16-rounded input.
    out_bf16 = jax.block_until_ready(
        sd_net_forward(sd_outs, fc_weight, fc_bias, compute_dtype=jnp.bfloat16))
    ref_bf16 = _reference(sd_outs.astype(jnp.bfloat16).astype(jnp.float32),
                          fc_weight, fc_bias)
    assert jnp.allclose(out_bf16, ref_bf16, atol=1e-3, rtol=1e-3), \
        "mismatch vs reference (bf16 input)"

    # 4) B > TB: >=2 blocks on the 'parallel' batch axis plus a clamped partial
    #    batch edge block (B=10 -> blocks of 8 and 2).
    B2 = 10
    sd_outs2 = jax.random.normal(k_x2, (B2, C, H, W), dtype=jnp.float32)
    ref2 = _reference(sd_outs2, fc_weight, fc_bias)
    out2 = jax.block_until_ready(sd_net_forward(sd_outs2, fc_weight, fc_bias))
    assert out2.shape == (B2, K)
    assert jnp.allclose(out2, ref2, atol=1e-4, rtol=1e-4), \
        "mismatch vs reference (partial batch edge block)"

    print("KERNEL_OK")
</pallas_src>

<mosaic_0001>
module attributes {stable_mosaic.version = 11 : i64} {
  func.func @kernel(%arg0: i32, %arg1: i32, %arg2: memref<2x16x1024xf32, #tpu.memory_space<vmem>>, %arg3: memref<1024x128xf32, #tpu.memory_space<vmem>>, %arg4: memref<1x128xf32, #tpu.memory_space<vmem>>, %arg5: memref<2x128xf32, #tpu.memory_space<vmem>>, %arg6: memref<2x8x1024xf32, #tpu.memory_space<vmem>>) attributes {dimension_semantics = [#tpu.dimension_semantics<parallel>, #tpu.dimension_semantics<arbitrary>], iteration_bounds = array<i64: 1, 1>, scalar_prefetch = 0 : i64, scratch_operands = 1 : i64, tpu.core_type = #tpu.core_type<tc>, window_params = [{transform_indices = @transform_0, window_bounds = array<i64: 2, 16, 1024>}, {pipeline_mode = #tpu.pipeline_mode<synchronous>, transform_indices = @transform_1, window_bounds = array<i64: 1024, 128>}, {pipeline_mode = #tpu.pipeline_mode<synchronous>, transform_indices = @transform_2, window_bounds = array<i64: 1, 128>}, {transform_indices = @transform_3, window_bounds = array<i64: 2, 128>}]} {
    %c0_i32 = arith.constant 0 : i32
    %0 = arith.cmpi eq, %arg1, %c0_i32 : i32
    %1 = arith.extui %0 : i1 to i32
    %c0_i32_0 = arith.constant 0 : i32
    %2 = arith.cmpi ne, %1, %c0_i32_0 : i32
    scf.if %2 {
      %cst = arith.constant 0.000000e+00 : f32
      %13 = vector.broadcast %cst : f32 to vector<2x8x1024xf32>
      %c0_9 = arith.constant 0 : index
      %c0_10 = arith.constant 0 : index
      %c0_11 = arith.constant 0 : index
      %14 = vector.load %arg6[%c0_9, %c0_10, %c0_11] : memref<2x8x1024xf32, #tpu.memory_space<vmem>>, vector<2x8x1024xf32>
      tpu.vector_store %arg6[%c0_9, %c0_10, %c0_11], %13 {strides = array<i32>} : memref<2x8x1024xf32, #tpu.memory_space<vmem>>, vector<2x8x1024xf32>,
    } else {
    }
    %c0 = arith.constant 0 : index
    %c0_1 = arith.constant 0 : index
    %c0_2 = arith.constant 0 : index
    %3 = vector.load %arg2[%c0, %c0_1, %c0_2] : memref<2x16x1024xf32, #tpu.memory_space<vmem>>, vector<2x16x1024xf32>
    %c0_i32_3 = arith.constant 0 : i32
    %4 = arith.cmpi ne, %arg1, %c0_i32_3 : i32
    %5 = arith.extui %4 : i1 to i32
    %c0_i32_4 = arith.constant 0 : i32
    %6 = arith.cmpi ne, %5, %c0_i32_4 : i32
    scf.if %6 {
      %c0_9 = arith.constant 0 : index
      %c0_10 = arith.constant 0 : index
      %c0_11 = arith.constant 0 : index
      %13 = vector.load %arg6[%c0_9, %c0_10, %c0_11] : memref<2x8x1024xf32, #tpu.memory_space<vmem>>, vector<2x8x1024xf32>
      %14 = vector.shape_cast %3 : vector<2x16x1024xf32> to vector<2x2x8x1024xf32>
      %cst = arith.constant dense<0.000000e+00> : vector<2x8x1024xf32>
      %15 = vector.multi_reduction <add>, %14, %cst [1] : vector<2x2x8x1024xf32> to vector<2x8x1024xf32>
      %16 = arith.addf %13, %15 : vector<2x8x1024xf32>
      %c0_12 = arith.constant 0 : index
      %c0_13 = arith.constant 0 : index
      %c0_14 = arith.constant 0 : index
      %17 = vector.load %arg6[%c0_12, %c0_13, %c0_14] : memref<2x8x1024xf32, #tpu.memory_space<vmem>>, vector<2x8x1024xf32>
      tpu.vector_store %arg6[%c0_12, %c0_13, %c0_14], %16 {strides = array<i32>} : memref<2x8x1024xf32, #tpu.memory_space<vmem>>, vector<2x8x1024xf32>,
    } else {
    }
    %c0_i32_5 = arith.constant 0 : i32
    %7 = arith.cmpi eq, %arg1, %c0_i32_5 : i32
    %8 = arith.extui %7 : i1 to i32
    %c0_i32_6 = arith.constant 0 : i32
    %9 = arith.cmpi ne, %8, %c0_i32_6 : i32
    scf.if %9 {
      %13 = tpu.iota {dimensions = array<i32: 1>} : vector<2x16x1024xi32>
      %c12_i32 = arith.constant 12 : i32
      %14 = vector.broadcast %c12_i32 : i32 to vector<2x16x1024xi32>
      %15 = arith.cmpi slt, %13, %14 : vector<2x16x1024xi32>
      %cst = arith.constant 0.000000e+00 : f32
      %16 = vector.broadcast %cst : f32 to vector<2x16x1024xf32>
      %17 = arith.select %15, %3, %16 : vector<2x16x1024xi1>, vector<2x16x1024xf32>
      %c0_9 = arith.constant 0 : index
      %c0_10 = arith.constant 0 : index
      %c0_11 = arith.constant 0 : index
      %18 = vector.load %arg6[%c0_9, %c0_10, %c0_11] : memref<2x8x1024xf32, #tpu.memory_space<vmem>>, vector<2x8x1024xf32>
      %19 = vector.shape_cast %17 : vector<2x16x1024xf32> to vector<2x2x8x1024xf32>
      %cst_12 = arith.constant dense<0.000000e+00> : vector<2x8x1024xf32>
      %20 = vector.multi_reduction <add>, %19, %cst_12 [1] : vector<2x2x8x1024xf32> to vector<2x8x1024xf32>
      %21 = arith.addf %18, %20 : vector<2x8x1024xf32>
      %c0_13 = arith.constant 0 : index
      %c0_14 = arith.constant 0 : index
      %c0_15 = arith.constant 0 : index
      %22 = vector.load %arg6[%c0_13, %c0_14, %c0_15] : memref<2x8x1024xf32, #tpu.memory_space<vmem>>, vector<2x8x1024xf32>
      tpu.vector_store %arg6[%c0_13, %c0_14, %c0_15], %21 {strides = array<i32>} : memref<2x8x1024xf32, #tpu.memory_space<vmem>>, vector<2x8x1024xf32>,
    } else {
    }
    %c0_i32_7 = arith.constant 0 : i32
    %10 = arith.cmpi eq, %arg1, %c0_i32_7 : i32
    %11 = arith.extui %10 : i1 to i32
    %c0_i32_8 = arith.constant 0 : i32
    %12 = arith.cmpi ne, %11, %c0_i32_8 : i32
    scf.if %12 {
      %c0_9 = arith.constant 0 : index
      %c0_10 = arith.constant 0 : index
      %c0_11 = arith.constant 0 : index
      %13 = vector.load %arg6[%c0_9, %c0_10, %c0_11] : memref<2x8x1024xf32, #tpu.memory_space<vmem>>, vector<2x8x1024xf32>
      %cst = arith.constant dense<0.000000e+00> : vector<2x1024xf32>
      %14 = vector.multi_reduction <add>, %13, %cst [1] : vector<2x8x1024xf32> to vector<2x1024xf32>
      %cst_12 = arith.constant 0.0833333358 : f32
      %15 = vector.broadcast %cst_12 : f32 to vector<2x1024xf32>
      %16 = arith.mulf %14, %15 : vector<2x1024xf32>
      %c0_13 = arith.constant 0 : index
      %c0_14 = arith.constant 0 : index
      %17 = vector.load %arg3[%c0_13, %c0_14] : memref<1024x128xf32, #tpu.memory_space<vmem>>, vector<1024x128xf32>
      %cst_15 = arith.constant dense<0.000000e+00> : vector<2x128xf32>
      %18 = tpu.matmul %16, %17, %cst_15 {dimension_numbers = #tpu.dot_dimension_numbers<[1], [0], [0], [1], [0, 0, 1, 1], [], []>} : vector<2x1024xf32>, vector<1024x128xf32>, vector<2x128xf32> -> vector<2x128xf32>
      %c0_16 = arith.constant 0 : index
      %c0_17 = arith.constant 0 : index
      %19 = vector.load %arg4[%c0_16, %c0_17] : memref<1x128xf32, #tpu.memory_space<vmem>>, vector<1x128xf32>
      %20 = vector.broadcast %19 : vector<1x128xf32> to vector<2x128xf32>
      %21 = arith.addf %18, %20 : vector<2x128xf32>
      %cst_18 = arith.constant dense<0xFF800000> : vector<2xf32>
      %22 = vector.multi_reduction <maximumf>, %21, %cst_18 [1] : vector<2x128xf32> to vector<2xf32>
      %23 = vector.shape_cast %22 : vector<2xf32> to vector<2x1xf32>
      %24 = vector.broadcast %23 : vector<2x1xf32> to vector<2x128xf32>
      %25 = arith.subf %21, %24 : vector<2x128xf32>
      %26 = math.exp %25 : vector<2x128xf32>
      %cst_19 = arith.constant dense<0.000000e+00> : vector<2xf32>
      %27 = vector.multi_reduction <add>, %26, %cst_19 [1] : vector<2x128xf32> to vector<2xf32>
      %28 = vector.shape_cast %27 : vector<2xf32> to vector<2x1xf32>
      %29 = math.log %28 : vector<2x1xf32>
      %30 = vector.broadcast %29 : vector<2x1xf32> to vector<2x128xf32>
      %31 = arith.subf %25, %30 : vector<2x128xf32>
      %c0_20 = arith.constant 0 : index
      %c0_21 = arith.constant 0 : index
      %32 = vector.load %arg5[%c0_20, %c0_21] : memref<2x128xf32, #tpu.memory_space<vmem>>, vector<2x128xf32>
      tpu.vector_store %arg5[%c0_20, %c0_21], %31 {strides = array<i32>} : memref<2x128xf32, #tpu.memory_space<vmem>>, vector<2x128xf32>,
    } else {
    }
    return
  }
  func.func @transform_0(%arg0: i32, %arg1: i32) -> (i32, i32, i32) {
    %c0_i32 = arith.constant 0 : i32
    %c0_i32_0 = arith.constant 0 : i32
    return %arg0, %arg1, %c0_i32 : i32, i32, i32
  }
  func.func @transform_1(%arg0: i32, %arg1: i32) -> (i32, i32) {
    %c0_i32 = arith.constant 0 : i32
    %c0_i32_0 = arith.constant 0 : i32
    %c0_i32_1 = arith.constant 0 : i32
    return %c0_i32, %c0_i32_0 : i32, i32
  }
  func.func @transform_2(%arg0: i32, %arg1: i32) -> (i32, i32) {
    %c0_i32 = arith.constant 0 : i32
    %c0_i32_0 = arith.constant 0 : i32
    %c0_i32_1 = arith.constant 0 : i32
    return %c0_i32, %c0_i32_0 : i32, i32
  }
  func.func @transform_3(%arg0: i32, %arg1: i32) -> (i32, i32) {
    %c0_i32 = arith.constant 0 : i32
    %c0_i32_0 = arith.constant 0 : i32
    return %arg0, %c0_i32 : i32, i32
  }
}

</mosaic_0001>

<bundles_post_ra>
// kernel: tpu_custom_call.1
= control target key start
LH: loop header
LB: loop body
LE: loop exit
PB: predicated region body
PF: predicated region fallthrough
CT: control target
= control target key end

     0   :  { %8 = vsyncpa [#allocation4], 0  ;;  %s1592_s0 = inlined_call_operand.vmem [shape: f32[2,12,1024], index: 0, kind: input, shape index: {}]   ;;  %s1593_s1 = inlined_call_operand.hbm [shape: f32[1024,128], index: 1, kind: input, shape index: {}]   ;;  %s1594_s2 = inlined_call_operand.vmem [shape: f32[1,128], index: 2, kind: input, shape index: {}]   ;;  %s1595_s3 = inlined_call_operand.hbm [shape: f32[2,128], index: 3, kind: output, shape index: {}]  }
   0x1   :  { %9 = vsyncpa [#allocation5], 0  ;;  %s1183_s12 = smov [#allocation3]   ;;  %s1135_s16 = scalar_lea.hbm %s1593_s1, 16384 }
   0x2   :  { %s17_s13 = sshll.u32 %s1183_s12, 4  ;;  %p1136_p0 = scmp.ne.s32.totalorder %s1593_s1, %s1135_s16  ;;  %s18_s13 = int_to_ptr.vmem [resolvable:$true] %s17_s13 }
   0x3   :  { %p1139_p1 = scmp.lt.u32.totalorder %s1135_s16, %s1593_s1 }
   0x5   :  { %p1141_p2 = pnand %p1139_p1, %p1136_p0 }
   0x7   :  { %1144 = shalt.err (!%p1141_p2)
}
   0x8   :  { %s1145_s21 = scalar_lea.vmem %s18_s13, 16384  ;;  %p1150_p4 = scmp.lt.s32.totalorder %s18_s13, %s18_s13 }
   0x9   :  { %p1146_p3 = scmp.ne.s32.totalorder %s18_s13, %s1145_s21  ;;  %p1151_p5 = scmp.lt.s32.totalorder %s1145_s21, %s1145_s21 }
   0xb   :  { %p1152_p6 = por %p1151_p5, %p1150_p4 }
   0xd   :  { %p1153_p7 = pnand %p1152_p6, %p1146_p3 }
   0xf   :  { %1156 = shalt.err (!%p1153_p7)
}
  0x10   :  { %s1184_s22 = smov 128   ;;  %s1185_s23 = smov 8  }
  0x11   :  { %23 = dma.hbm_to_vmem [thread:$0]  %s1593_s1, 16384, %s18_s13, [#allocation4], %s1184_s22, %s1184_s22, %s1185_s23  }
  0x12   :  { %1179 = dma.done.wait [#allocation4], 16384  }
  0x13   :  { %1180 = vsyncadd [#allocation4], 4294950912  ;;  %v397_v0 = vld [vmem:[#allocation3 + $0x80] sm:$0xff]  ;;  %v398_v1 = vld [vmem:[#allocation3 + $0x88] sm:$0xff]  ;;  %v152_v33 = vlaneseq  ;;  %vm532_vm1 = vcmask 1041409   ;;  %vm829_vm2 = vcmask 1041408  }
  0x14   :  { %v381_v2 = vld [vmem:[#allocation3] sm:$0xff]  ;;  %v999_v3 = vpack.c.bf16 %v398_v1, %v397_v0  ;;  %v382_v4 = vld [vmem:[#allocation3 + $0x8] sm:$0xff]  ;;  %v399_v11 = vld [vmem:[#allocation3 + $0x90] sm:$0xff] }
  0x15   :  { %v429_v5 = vld [vmem:[#allocation3 + $0x180] sm:$0xff]  ;;  %v430_v6 = vld [vmem:[#allocation3 + $0x188] sm:$0xff]  ;;  %v1001_v7 = vpack.c.bf16 %v382_v4, %v381_v2  ;;  %v400_v13 = vld [vmem:[#allocation3 + $0x98] sm:$0xff]  ;;  %v153_v49 = vshrl.u32 %v152_v33, 7 }
  0x16   :  { %v1031_v8 = vpack.c.bf16 %v430_v6, %v429_v5  ;;  %v413_v9 = vld [vmem:[#allocation3 + $0x100] sm:$0xff]  ;;  %v414_v10 = vld [vmem:[#allocation3 + $0x108] sm:$0xff]  ;;  %1000 = vmatprep.subr.bf16.mxu0 %v999_v3  ;;  %v383_v14 = vld [vmem:[#allocation3 + $0x10] sm:$0xff]  ;;  %v1003_v16 = vpack.c.bf16 %v400_v13, %v399_v11 }
  0x17   :  { %v1033_v12 = vpack.c.bf16 %v414_v10, %v413_v9  ;;  %v384_v15 = vld [vmem:[#allocation3 + $0x18] sm:$0xff]  ;;  %1002 = vmatpush3.bf16.msra.mxu0 %v1001_v7  ;;  %v431_v18 = vld [vmem:[#allocation3 + $0x190] sm:$0xff]  ;;  %v401_v23 = vld [vmem:[#allocation3 + $0xa0] sm:$0xff]  ;;  %v1219_v2 = vadd.s32 8, %v153_v49 }
  0x18   :  { %1032 = vmatprep.subr.bf16.mxu1 %v1031_v8  ;;  %v1005_v17 = vpack.c.bf16 %v384_v15, %v383_v14  ;;  %v432_v19 = vld [vmem:[#allocation3 + $0x198] sm:$0xff]  ;;  %v415_v20 = vld [vmem:[#allocation3 + $0x110] sm:$0xff]  ;;  %v402_v24 = vld [vmem:[#allocation3 + $0xa8] sm:$0xff]  ;;  %1004 = vmatprep.subr.bf16.mxu0 %v1003_v16 }
  0x19   :  { %1034 = vmatpush3.bf16.msra.mxu1 %v1033_v12  ;;  %v1035_v21 = vpack.c.bf16 %v432_v19, %v431_v18  ;;  %v416_v22 = vld [vmem:[#allocation3 + $0x118] sm:$0xff]  ;;  %v1007_v26 = vpack.c.bf16 %v402_v24, %v401_v23  ;;  %v385_v27 = vld [vmem:[#allocation3 + $0x20] sm:$0xff]  ;;  %v386_v28 = vld [vmem:[#allocation3 + $0x28] sm:$0xff]  ;;  %vm156_vm0 = vcmp.lt.s32.totalorder %v1219_v2, 12 }
  0x1a   :  { %v1037_v25 = vpack.c.bf16 %v416_v22, %v415_v20  ;;  %v433_v29 = vld [vmem:[#allocation3 + $0x1a0] sm:$0xff]  ;;  %v434_v30 = vld [vmem:[#allocation3 + $0x1a8] sm:$0xff]  ;;  %v1009_v34 = vpack.c.bf16 %v386_v28, %v385_v27  ;;  %v403_v36 = vld [vmem:[#allocation3 + $0xb0] sm:$0xff] }
  0x1b   :  { %1036 = vmatprep.subr.bf16.mxu1 %v1035_v21  ;;  %v417_v31 = vld [vmem:[#allocation3 + $0x120] sm:$0xff]  ;;  %v418_v32 = vld [vmem:[#allocation3 + $0x128] sm:$0xff]  ;;  %1006 = vmatpush3.bf16.msra.mxu0 %v1005_v17  ;;  %v1039_v35 = vpack.c.bf16 %v434_v30, %v433_v29  ;;  %v404_v37 = vld [vmem:[#allocation3 + $0xb8] sm:$0xff] }
  0x1c   :  { %v387_v38 = vld [vmem:[#allocation3 + $0x30] sm:$0xff]  ;;  %1008 = vmatprep.subr.bf16.mxu0 %v1007_v26  ;;  %v1041_v39 = vpack.c.bf16 %v418_v32, %v417_v31  ;;  %v1011_v40 = vpack.c.bf16 %v404_v37, %v403_v36  ;;  %v388_v41 = vld [vmem:[#allocation3 + $0x38] sm:$0xff]  ;;  %v405_v47 = vld [vmem:[#allocation3 + $0xc0] sm:$0xff] }
  0x1d   :  { %1038 = vmatpush3.bf16.msra.mxu1 %v1037_v25  ;;  %v435_v42 = vld [vmem:[#allocation3 + $0x1b0] sm:$0xff]  ;;  %v436_v43 = vld [vmem:[#allocation3 + $0x1b8] sm:$0xff]  ;;  %v406_v48 = vld [vmem:[#allocation3 + $0xc8] sm:$0xff]  ;;  %v1013_v50 = vpack.c.bf16 %v388_v41, %v387_v38 }
  0x1e   :  { %1040 = vmatprep.subr.bf16.mxu1 %v1039_v35  ;;  %v1043_v44 = vpack.c.bf16 %v436_v43, %v435_v42  ;;  %v419_v45 = vld [vmem:[#allocation3 + $0x130] sm:$0xff]  ;;  %v420_v46 = vld [vmem:[#allocation3 + $0x138] sm:$0xff]  ;;  %v437_v51 = vld [vmem:[#allocation3 + $0x1c0] sm:$0xff]  ;;  %v1015_v54 = vpack.c.bf16 %v406_v48, %v405_v47 }
  0x1f   :  { %1010 = vmatpush3.bf16.msra.mxu0 %v1009_v34  ;;  %v438_v52 = vld [vmem:[#allocation3 + $0x1c8] sm:$0xff]  ;;  %v1045_v53 = vpack.c.bf16 %v420_v46, %v419_v45  ;;  %v389_v55 = vld [vmem:[#allocation3 + $0x40] sm:$0xff]  ;;  %v407_v60 = vld [vmem:[#allocation3 + $0xd0] sm:$0xff] }
  0x20   :  { %1012 = vmatprep.subr.bf16.mxu0 %v1011_v40  ;;  %v390_v56 = vld [vmem:[#allocation3 + $0x48] sm:$0xff]  ;;  %v421_v57 = vld [vmem:[#allocation3 + $0x140] sm:$0xff]  ;;  %v1047_v58 = vpack.c.bf16 %v438_v52, %v437_v51  ;;  %v408_v61 = vld [vmem:[#allocation3 + $0xd8] sm:$0xff] }
  0x21   :  { %1042 = vmatpush3.bf16.msra.mxu1 %v1041_v39  ;;  %v422_v59 = vld [vmem:[#allocation3 + $0x148] sm:$0xff]  ;;  %v391_v62 = vld [vmem:[#allocation3 + $0x50] sm:$0xff]  ;;  %v392_v63 = vld [vmem:[#allocation3 + $0x58] sm:$0xff]  ;;  %v1017_v3 = vpack.c.bf16 %v390_v56, %v389_v55  ;;  %v1019_v9 = vpack.c.bf16 %v408_v61, %v407_v60 }
  0x22   :  { %1044 = vmatprep.subr.bf16.mxu1 %v1043_v44  ;;  %v439_v0 = vld [vmem:[#allocation3 + $0x1d0] sm:$0xff]  ;;  %v440_v1 = vld [vmem:[#allocation3 + $0x1d8] sm:$0xff]  ;;  %v409_v6 = vld [vmem:[#allocation3 + $0xe0] sm:$0xff]  ;;  %v1049_v8 = vpack.c.bf16 %v422_v59, %v421_v57  ;;  %v1021_v20 = vpack.c.bf16 %v392_v63, %v391_v62 }
  0x23   :  { %1014 = vmatpush3.bf16.msra.mxu0 %v1013_v50  ;;  %v423_v4 = vld [vmem:[#allocation3 + $0x150] sm:$0xff]  ;;  %v424_v5 = vld [vmem:[#allocation3 + $0x158] sm:$0xff]  ;;  %v410_v7 = vld [vmem:[#allocation3 + $0xe8] sm:$0xff]  ;;  %v1051_v13 = vpack.c.bf16 %v440_v1, %v439_v0 }
  0x24   :  { %1016 = vmatprep.subr.bf16.mxu0 %v1015_v54  ;;  %v1221_v10 = vld [vmem:[#allocation3 + $0x60] sm:$0xff]  ;;  %v1223_v11 = vld [vmem:[#allocation3 + $0x68] sm:$0xff]  ;;  %v1229_v17 = vld [vmem:[#allocation3 + $0xf0] sm:$0xff]  ;;  %v1053_v24 = vpack.c.bf16 %v424_v5, %v423_v4  ;;  %v1023_v25 = vpack.c.bf16 %v410_v7, %v409_v6 }
  0x25   :  { %1046 = vmatpush3.bf16.msra.mxu1 %v1045_v53  ;;  %v441_v12 = vld [vmem:[#allocation3 + $0x1e0] sm:$0xff]  ;;  %v442_v14 = vld [vmem:[#allocation3 + $0x1e8] sm:$0xff]  ;;  %v1231_v18 = vld [vmem:[#allocation3 + $0xf8] sm:$0xff]  ;;  %v1025_v30 = vpack.c.bf16 %v1223_v11, %v1221_v10 }
  0x26   :  { %1048 = vmatprep.subr.bf16.mxu1 %v1047_v58  ;;  %v1225_v15 = vld [vmem:[#allocation3 + $0x160] sm:$0xff]  ;;  %v1227_v16 = vld [vmem:[#allocation3 + $0x168] sm:$0xff]  ;;  %v1233_v19 = vld [vmem:[#allocation3 + $0x70] sm:$0xff]  ;;  %v1055_v31 = vpack.c.bf16 %v442_v14, %v441_v12  ;;  %v1027_v37 = vpack.c.bf16 %v1231_v18, %v1229_v17 }
  0x27   :  { %1018 = vmatpush3.bf16.msra.mxu0 %v1017_v3  ;;  %v1236_v21 = vld [vmem:[#allocation3 + $0x78] sm:$0xff]  ;;  %v1238_v22 = vld [vmem:[#allocation3 + $0x1f0] sm:$0xff]  ;;  %v50_v28 = vld [vmem:[%s1592_s0 + $0x8] sm:$0xff]  ;;  %v1057_v36 = vpack.c.bf16 %v1227_v16, %v1225_v15 }
  0x28   :  { %v1240_v23 = vld [vmem:[#allocation3 + $0x1f8] sm:$0xff]  ;;  %1020 = vmatprep.subr.bf16.mxu0 %v1019_v9  ;;  %v1242_v26 = vld [vmem:[#allocation3 + $0x170] sm:$0xff]  ;;  %v58_v29 = vld [vmem:[%s1592_s0 + $0x48] sm:$0xff]  ;;  %v1029_v43 = vpack.c.bf16 %v1236_v21, %v1233_v19 }
  0x29   :  { %1050 = vmatpush3.bf16.msra.mxu1 %v1049_v8  ;;  %v1244_v27 = vld [vmem:[#allocation3 + $0x178] sm:$0xff]  ;;  %v66_v32 = vld [vmem:[%s1592_s0 + $0x88] sm:$0xff]  ;;  %v166_v34 = vsel %vm156_vm0, %v58_v29, 0.0  ;;  %v49_v35 = vld [vmem:[%s1592_s0] sm:$0xff]  ;;  %v1059_v50 = vpack.c.bf16 %v1240_v23, %v1238_v22 }
  0x2a   :  { %1052 = vmatprep.subr.bf16.mxu1 %v1051_v13  ;;  %v74_v33 = vld [vmem:[%s1592_s0 + $0xc8] sm:$0xff]  ;;  %v206_v39 = vadd.f32 %v166_v34, %v50_v28  ;;  %v57_v40 = vld [vmem:[%s1592_s0 + $0x40] sm:$0xff]  ;;  %v52_v49 = vld [vmem:[%s1592_s0 + $0x18] sm:$0xff]  ;;  %v1061_v57 = vpack.c.bf16 %v1244_v27, %v1242_v26 }
  0x2b   :  { %v182_v38 = vsel %vm156_vm0, %v74_v33, 0.0  ;;  %v65_v41 = vld [vmem:[%s1592_s0 + $0x80] sm:$0xff]  ;;  %1022 = vmatpush3.bf16.msra.mxu0 %v1021_v20  ;;  %v165_v45 = vsel %vm156_vm0, %v57_v40, 0.0  ;;  %v462_v48 = vld [vmem:[#allocation3 + $0x288] sm:$0xff]  ;;  %v60_v54 = vld [vmem:[%s1592_s0 + $0x58] sm:$0xff] }
  0x2c   :  { %v73_v42 = vld [vmem:[%s1592_s0 + $0xc0] sm:$0xff]  ;;  %v214_v44 = vadd.f32 %v182_v38, %v66_v32  ;;  %1024 = vmatprep.subr.bf16.mxu0 %v1023_v25  ;;  %v275_v51 = vrot.slane %v206_v39, 4  ;;  %v205_v52 = vadd.f32 %v165_v45, %v49_v35  ;;  %v68_v55 = vld [vmem:[%s1592_s0 + $0x98] sm:$0xff]  ;;  %v168_v59 = vsel %vm156_vm0, %v60_v54, 0.0  ;;  %v494_v3 = vld [vmem:[#allocation3 + $0x388] sm:$0xff] }
  0x2d   :  { %v181_v46 = vsel %vm156_vm0, %v73_v42, 0.0  ;;  %v461_v47 = vld [vmem:[#allocation3 + $0x280] sm:$0xff]  ;;  %1054 = vmatpush3.bf16.msra.mxu1 %v1053_v24  ;;  %v76_v56 = vld [vmem:[%s1592_s0 + $0xd8] sm:$0xff]  ;;  %v208_v1 = vadd.f32 %v168_v59, %v52_v49  ;;  %v59_v4 = vld [vmem:[%s1592_s0 + $0x50] sm:$0xff] }
  0x2e   :  { %v213_v53 = vadd.f32 %v181_v46, %v65_v41  ;;  %1056 = vmatprep.subr.bf16.mxu1 %v1055_v31  ;;  %v323_v58 = vrot.slane %v214_v44, 4  ;;  %v184_v60 = vsel %vm156_vm0, %v76_v56, 0.0  ;;  %v493_v61 = vld [vmem:[#allocation3 + $0x380] sm:$0xff]  ;;  %v276_v62 = vadd.f32 %v275_v51, %v206_v39  ;;  %v75_v9 = vld [vmem:[%s1592_s0 + $0xd0] sm:$0xff] }
  0x2f   :  { %v269_v63 = vrot.slane %v205_v52, 4  ;;  %1026 = vmatpush3.bf16.msra.mxu0 %v1025_v30  ;;  %v1063_v6 = vpack.c.bf16 %v462_v48, %v461_v47  ;;  %v216_v7 = vadd.f32 %v184_v60, %v68_v55  ;;  %v1095_v8 = vpack.c.bf16 %v494_v3, %v493_v61  ;;  %v51_v14 = vld [vmem:[%s1592_s0 + $0x10] sm:$0xff]  ;;  %v445_v42 = vld [vmem:[#allocation3 + $0x200] sm:$0xff]  ;;  %v464_v55 = vld [vmem:[#allocation3 + $0x298] sm:$0xff] }
  0x30   :  { %v317_v0 = vrot.slane %v213_v53, 4  ;;  %v324_v5 = vadd.f32 %v323_v58, %v214_v44  ;;  %1028 = vmatprep.subr.bf16.mxu0 %v1027_v37  ;;  %v277_v10 = vrot.slane %v276_v62, 2  ;;  %v287_v13 = vrot.slane %v208_v1, 4  ;;  %v67_v15 = vld [vmem:[%s1592_s0 + $0x90] sm:$0xff] }
  0x31   :  { %1058 = vmatpush3.bf16.msra.mxu1 %v1057_v36  ;;  %v270_v11 = vadd.f32 %v269_v63, %v205_v52  ;;  %v335_v17 = vrot.slane %v216_v7, 4  ;;  %v167_v18 = vsel %vm156_vm0, %v59_v4, 0.0  ;;  %v183_v19 = vsel %vm156_vm0, %v75_v9, 0.0  ;;  %v1330_v9 = vld [vmem:[#allocation3 + $0x398] sm:$0xff] }
  0x32   :  { %v318_v12 = vadd.f32 %v317_v0, %v213_v53  ;;  %1060 = vmatprep.subr.bf16.mxu1 %v1059_v50  ;;  %v325_v16 = vrot.slane %v324_v5, 2  ;;  %v278_v20 = vadd.f32 %v277_v10, %v276_v62  ;;  %v288_v23 = vadd.f32 %v287_v13, %v208_v1  ;;  %v463_v50 = vld [vmem:[#allocation3 + $0x290] sm:$0xff]  ;;  %v448_v1 = vld [vmem:[#allocation3 + $0x218] sm:$0xff]  ;;  %v465_v10 = vld [vmem:[#allocation3 + $0x2a0] sm:$0xff] }
  0x33   :  { %v271_v21 = vrot.slane %v270_v11, 2  ;;  %1030 = vmatpush3.bf16.msra.mxu0 %v1029_v43  ;;  %v336_v25 = vadd.f32 %v335_v17, %v216_v7  ;;  %v207_v26 = vadd.f32 %v167_v18, %v51_v14  ;;  %v215_v27 = vadd.f32 %v183_v19, %v67_v15  ;;  %v446_v43 = vld [vmem:[#allocation3 + $0x208] sm:$0xff]  ;;  %v447_v0 = vld [vmem:[#allocation3 + $0x210] sm:$0xff]  ;;  %v1336_v17 = vld [vmem:[#allocation3 + $0x220] sm:$0xff] }
  0x34   :  { %v319_v22 = vrot.slane %v318_v12, 2  ;;  %v326_v24 = vadd.f32 %v325_v16, %v324_v5  ;;  %v279_v28 = vrot.slane %v278_v20, 1  ;;  %1064 = vmatprep.subr.bf16.mxu0 %v1063_v6  ;;  %v289_v31 = vrot.slane %v288_v23, 2  ;;  %v1324_v5 = vld [vmem:[#allocation3 + $0x300] sm:$0xff]  ;;  %v1326_v6 = vld [vmem:[#allocation3 + $0x308] sm:$0xff]  ;;  %v1332_v15 = vld [vmem:[#allocation3 + $0x310] sm:$0xff] }
  0x35   :  { %1062 = vmatpush3.bf16.msra.mxu1 %v1061_v57  ;;  %v272_v29 = vadd.f32 %v271_v21, %v270_v11  ;;  %v337_v33 = vrot.slane %v336_v25, 2  ;;  %v281_v34 = vrot.slane %v207_v26, 4  ;;  %v329_v35 = vrot.slane %v215_v27, 4  ;;  %v466_v11 = vld [vmem:[#allocation3 + $0x2a8] sm:$0xff]  ;;  %v1334_v16 = vld [vmem:[#allocation3 + $0x318] sm:$0xff]  ;;  %v1340_v19 = vld [vmem:[#allocation3 + $0x3a0] sm:$0xff] }
  0x36   :  { %v320_v30 = vadd.f32 %v319_v22, %v318_v12  ;;  %v327_v32 = vrot.slane %v326_v24, 1  ;;  %1096 = vmatprep.subr.bf16.mxu1 %v1095_v8  ;;  %v280_v36 = vadd.f32 %v279_v28, %v278_v20  ;;  %v290_v39 = vadd.f32 %v289_v31, %v288_v23  ;;  %v1328_v8 = vld [vmem:[#allocation3 + $0x390] sm:$0xff]  ;;  %v1338_v18 = vld [vmem:[#allocation3 + $0x228] sm:$0xff]  ;;  %v1344_v21 = vld [vmem:[#allocation3 + $0x320] sm:$0xff] }
  0x37   :  { %v273_v37 = vrot.slane %v272_v29, 1  ;;  %v338_v41 = vadd.f32 %v337_v33, %v336_v25  ;;  %v282_v44 = vadd.f32 %v281_v34, %v207_v26  ;;  %v330_v45 = vadd.f32 %v329_v35, %v215_v27  ;;  %v1342_v20 = vld [vmem:[#allocation3 + $0x3a8] sm:$0xff]  ;;  %v1350_v25 = vld [vmem:[#allocation3 + $0x2b8] sm:$0xff]  ;;  %v1352_v26 = vld [vmem:[#allocation3 + $0x230] sm:$0xff] }
  0x38   :  { %v321_v38 = vrot.slane %v320_v30, 1  ;;  %v328_v40 = vadd.f32 %v327_v32, %v326_v24  ;;  %v366_v46 = vmul.f32 0.083333336, %v280_v36  ;;  %v291_v49 = vrot.slane %v290_v39, 1  ;;  %v1346_v22 = vld [vmem:[#allocation3 + $0x328] sm:$0xff]  ;;  %v1348_v24 = vld [vmem:[#allocation3 + $0x2b0] sm:$0xff] }
  0x39   :  { %v274_v47 = vadd.f32 %v273_v37, %v272_v29  ;;  %v339_v52 = vrot.slane %v338_v41, 1  ;;  %v283_v53 = vrot.slane %v282_v44, 2  ;;  %v331_v54 = vrot.slane %v330_v45, 2  ;;  %v1354_v27 = vld [vmem:[#allocation3 + $0x238] sm:$0xff]  ;;  %v1356_v28 = vld [vmem:[#allocation3 + $0x3b0] sm:$0xff]  ;;  %v1365_v36 = vld [vmem:[#allocation3 + $0x2c0] sm:$0xff] }
  0x3a   :  { %v322_v48 = vadd.f32 %v321_v38, %v320_v30  ;;  %v374_v51 = vmul.f32 0.083333336, %v328_v40  ;;  %v292_v58 = vadd.f32 %v291_v49, %v290_v39  ;;  %v1065_v59 = vpack.c.bf16 %v446_v43, %v445_v42  ;;  %v1358_v29 = vld [vmem:[#allocation3 + $0x3b8] sm:$0xff]  ;;  %v1361_v34 = vld [vmem:[#allocation3 + $0x330] sm:$0xff]  ;;  %v1367_v37 = vld [vmem:[#allocation3 + $0x2c8] sm:$0xff] }
  0x3b   :  { %v365_v56 = vmul.f32 0.083333336, %v274_v47  ;;  %v340_v61 = vadd.f32 %v339_v52, %v338_v41  ;;  %v284_v62 = vadd.f32 %v283_v53, %v282_v44  ;;  %v332_v63 = vadd.f32 %v331_v54, %v330_v45  ;;  %v1363_v35 = vld [vmem:[#allocation3 + $0x338] sm:$0xff]  ;;  %v1369_v38 = vld [vmem:[#allocation3 + $0x240] sm:$0xff]  ;;  %v1371_v39 = vld [vmem:[#allocation3 + $0x248] sm:$0xff] }
  0x3c   :  { %v373_v57 = vmul.f32 0.083333336, %v322_v48  ;;  %v534_v60 = vsel %vm532_vm1, %v374_v51, %v366_v46  ;;  %v368_v4 = vmul.f32 0.083333336, %v292_v58  ;;  %v1067_v7 = vpack.c.bf16 %v464_v55, %v463_v50  ;;  %v1373_v40 = vld [vmem:[#allocation3 + $0x3c0] sm:$0xff]  ;;  %v1375_v41 = vld [vmem:[#allocation3 + $0x3c8] sm:$0xff] }
  0x3d   :  { %613 = vmatprep.mubr.f32.mxu0 %v534_v60  ;;  %v376_v12 = vmul.f32 0.083333336, %v340_v61  ;;  %v285_v13 = vrot.slane %v284_v62, 1  ;;  %v333_v14 = vrot.slane %v332_v63, 1  ;;  %v1069_v23 = vpack.c.bf16 %v448_v1, %v447_v0  ;;  %v1377_v42 = vld [vmem:[#allocation3 + $0x340] sm:$0xff]  ;;  %v1379_v43 = vld [vmem:[#allocation3 + $0x348] sm:$0xff] }
  0x3e   :  { %v533_v3 = vsel %vm532_vm1, %v373_v57, %v365_v56  ;;  %v1071_v33 = vpack.c.bf16 %v466_v11, %v465_v10  ;;  %v1381_v44 = vld [vmem:[#allocation3 + $0x2d0] sm:$0xff]  ;;  %v1383_v45 = vld [vmem:[#allocation3 + $0x2d8] sm:$0xff]  ;;  %v1097_v52 = vpack.c.bf16 %v1326_v6, %v1324_v5  ;;  %v1099_v53 = vpack.c.bf16 %v1330_v9, %v1328_v8  ;;  %v1409_v60 = vld [vmem:[#allocation3 + $0x2e0] sm:$0xff] }
  0x3f   :  { %614 = vmatmul.mubr.f32.vlgmr.msra.gmra.mrb[0].mxu0 %v533_v3  ;;  %v536_v30 = vsel %vm532_vm1, %v376_v12, %v368_v4  ;;  %v286_v31 = vadd.f32 %v285_v13, %v284_v62  ;;  %v334_v32 = vadd.f32 %v333_v14, %v332_v63  ;;  %v1385_v46 = vld [vmem:[#allocation3 + $0x250] sm:$0xff]  ;;  %v1387_v47 = vld [vmem:[#allocation3 + $0x258] sm:$0xff]  ;;  %v1101_v56 = vpack.c.bf16 %v1334_v16, %v1332_v15  ;;  %v1411_v61 = vld [vmem:[#allocation3 + $0x2e8] sm:$0xff] }
  0x40   :  { %1066 = vmatpush3.bf16.msra.mxu0 %v1065_v59  ;;  %683 = vmatprep.mubr.f32.mxu1 %v536_v30  ;;  %v1389_v48 = vld [vmem:[#allocation3 + $0x3d0] sm:$0xff]  ;;  %v1391_v49 = vld [vmem:[#allocation3 + $0x3d8] sm:$0xff]  ;;  %v1073_v57 = vpack.c.bf16 %v1338_v18, %v1336_v17  ;;  %v1103_v58 = vpack.c.bf16 %v1342_v20, %v1340_v19  ;;  %v1105_v59 = vpack.c.bf16 %v1346_v22, %v1344_v21  ;;  %v1413_v62 = vld [vmem:[#allocation3 + $0x260] sm:$0xff] }
  0x41   :  { %1068 = vmatprep.subr.bf16.mxu0 %v1067_v7  ;;  %v367_v50 = vmul.f32 0.083333336, %v286_v31  ;;  %v375_v51 = vmul.f32 0.083333336, %v334_v32  ;;  %v1397_v54 = vld [vmem:[#allocation3 + $0x350] sm:$0xff]  ;;  %v1399_v55 = vld [vmem:[#allocation3 + $0x358] sm:$0xff]  ;;  %v1075_v0 = vpack.c.bf16 %v1350_v25, %v1348_v24  ;;  %v1077_v1 = vpack.c.bf16 %v1354_v27, %v1352_v26 }
  0x42   :  { %v1107_v3 = vpack.c.bf16 %v1358_v29, %v1356_v28  ;;  %v1422_v4 = vld [vmem:[#allocation3 + $0x268] sm:$0xff]  ;;  %v1424_v5 = vld [vmem:[#allocation3 + $0x3e0] sm:$0xff]  ;;  %v1109_v7 = vpack.c.bf16 %v1363_v35, %v1361_v34  ;;  %v1079_v8 = vpack.c.bf16 %v1367_v37, %v1365_v36  ;;  %v1081_v9 = vpack.c.bf16 %v1371_v39, %v1369_v38  ;;  %v1436_v11 = vld [vmem:[#allocation3 + $0x2f0] sm:$0xff] }
  0x43   :  { %v535_v63 = vsel %vm532_vm1, %v375_v51, %v367_v50  ;;  %v1426_v6 = vld [vmem:[#allocation3 + $0x3e8] sm:$0xff]  ;;  %v1111_v10 = vpack.c.bf16 %v1375_v41, %v1373_v40  ;;  %v1438_v12 = vld [vmem:[#allocation3 + $0x2f8] sm:$0xff]  ;;  %v1440_v13 = vld [vmem:[#allocation3 + $0x270] sm:$0xff]  ;;  %v1113_v14 = vpack.c.bf16 %v1379_v43, %v1377_v42  ;;  %v1083_v15 = vpack.c.bf16 %v1383_v45, %v1381_v44 }
  0x44   :  { %1070 = vmatpush3.bf16.msra.mxu0 %v1069_v23  ;;  %684 = vmatmul.mubr.f32.vlgmr.msra.gmra.mrb[0].mxu1 %v535_v63  ;;  %v1085_v16 = vpack.c.bf16 %v1387_v47, %v1385_v46  ;;  %v1450_v18 = vld [vmem:[#allocation3 + $0x278] sm:$0xff]  ;;  %v54_v19 = vld [vmem:[%s1592_s0 + $0x28] sm:$0xff]  ;;  %v1087_v24 = vpack.c.bf16 %v1411_v61, %v1409_v60  ;;  %v53_v31 = vld [vmem:[%s1592_s0 + $0x20] sm:$0xff]  ;;  %v1596_v60 = vpack.c.bf16 %v1391_v49, %v1389_v48 }
  0x45   :  { %1072 = vmatprep.subr.bf16.mxu0 %v1071_v33  ;;  %1098 = vmatpush3.bf16.msra.mxu1 %v1097_v52  ;;  %v62_v20 = vld [vmem:[%s1592_s0 + $0x68] sm:$0xff]  ;;  %v61_v50 = vld [vmem:[%s1592_s0 + $0x60] sm:$0xff]  ;;  %v63_v32 = vld [vmem:[%s1592_s0 + $0x70] sm:$0xff]  ;;  %v1597_v61 = vpack.c.bf16 %v1422_v4, %v1413_v62  ;;  %v1598_v42 = vpack.c.bf16 %v1438_v12, %v1436_v11  ;;  %v1599_v4 = vpack.c.bf16 %v1399_v55, %v1397_v54 }
  0x46   :  { %1100 = vmatprep.subr.bf16.mxu1 %v1099_v53  ;;  %v70_v26 = vld [vmem:[%s1592_s0 + $0xa8] sm:$0xff]  ;;  %v170_v30 = vsel %vm156_vm0, %v62_v20, 0.0  ;;  %v69_v51 = vld [vmem:[%s1592_s0 + $0xa0] sm:$0xff]  ;;  %v169_v63 = vsel %vm156_vm0, %v61_v50, 0.0  ;;  %v64_v20 = vld [vmem:[%s1592_s0 + $0x78] sm:$0xff]  ;;  %v1600_v11 = vpack.c.bf16 %v1426_v6, %v1424_v5  ;;  %v1601_v12 = vpack.c.bf16 %v1450_v18, %v1440_v13 }
  0x47   :  { %v78_v27 = vld [vmem:[%s1592_s0 + $0xe8] sm:$0xff]  ;;  %v210_v37 = vadd.f32 %v170_v30, %v54_v19  ;;  %v77_v52 = vld [vmem:[%s1592_s0 + $0xe0] sm:$0xff]  ;;  %v56_v19 = vld [vmem:[%s1592_s0 + $0x38] sm:$0xff]  ;;  %v209_v30 = vadd.f32 %v169_v63, %v53_v31 }
  0x48   :  { %1074 = vmatpush3.bf16.msra.mxu0 %v1073_v57  ;;  %v186_v36 = vsel %vm156_vm0, %v78_v27, 0.0  ;;  %v72_v27 = vld [vmem:[%s1592_s0 + $0xb8] sm:$0xff]  ;;  %v55_v53 = vld [vmem:[%s1592_s0 + $0x30] sm:$0xff] }
  0x49   :  { %1076 = vmatprep.subr.bf16.mxu0 %v1075_v0  ;;  %v218_v57 = vadd.f32 %v186_v36, %v70_v26  ;;  %v185_v0 = vsel %vm156_vm0, %v77_v52, 0.0  ;;  %1102 = vmatpush3.bf16.msra.mxu1 %v1101_v56  ;;  %v299_v26 = vrot.slane %v210_v37, 4  ;;  %v80_v50 = vld [vmem:[%s1592_s0 + $0xf8] sm:$0xff]  ;;  %v172_v52 = vsel %vm156_vm0, %v64_v20, 0.0  ;;  %v79_v63 = vld [vmem:[%s1592_s0 + $0xf0] sm:$0xff] }
  0x4a   :  { %v217_v36 = vadd.f32 %v185_v0, %v69_v51  ;;  %1104 = vmatprep.subr.bf16.mxu1 %v1103_v58  ;;  %v188_v31 = vsel %vm156_vm0, %v80_v50, 0.0  ;;  %v212_v51 = vadd.f32 %v172_v52, %v56_v19  ;;  %v171_v0 = vsel %vm156_vm0, %v63_v32, 0.0  ;;  %v71_v58 = vld [vmem:[%s1592_s0 + $0xb0] sm:$0xff] }
  0x4b   :  { %v347_v56 = vrot.slane %v218_v57, 4  ;;  %v300_v20 = vadd.f32 %v299_v26, %v210_v37  ;;  %v293_v23 = vrot.slane %v209_v30, 4  ;;  %v220_v25 = vadd.f32 %v188_v31, %v72_v27  ;;  %v507_v43 = vld [vmem:[#allocation3 + $0x3f0] sm:$0xff] }
  0x4c   :  { %1078 = vmatpush3.bf16.msra.mxu0 %v1077_v1  ;;  %v341_v33 = vrot.slane %v217_v36, 4  ;;  %v311_v17 = vrot.slane %v212_v51, 4  ;;  %v187_v19 = vsel %vm156_vm0, %v79_v63, 0.0  ;;  %v211_v50 = vadd.f32 %v171_v0, %v55_v53 }
  0x4d   :  { %1080 = vmatprep.subr.bf16.mxu0 %v1079_v8  ;;  %v348_v1 = vadd.f32 %v347_v56, %v218_v57  ;;  %1106 = vmatpush3.bf16.msra.mxu1 %v1105_v59  ;;  %v301_v32 = vrot.slane %v300_v20, 2  ;;  %v294_v8 = vadd.f32 %v293_v23, %v209_v30  ;;  %v359_v26 = vrot.slane %v220_v25, 4  ;;  %v490_v56 = vld [vmem:[#allocation3 + $0x368] sm:$0xff] }
  0x4e   :  { %v342_v37 = vadd.f32 %v341_v33, %v217_v36  ;;  %1108 = vmatprep.subr.bf16.mxu1 %v1107_v3  ;;  %v312_v2 = vadd.f32 %v311_v17, %v212_v51  ;;  %v219_v27 = vadd.f32 %v187_v19, %v71_v58  ;;  %v305_v53 = vrot.slane %v211_v50, 4 }
  0x4f   :  { %v349_v57 = vrot.slane %v348_v1, 2  ;;  %v302_v21 = vadd.f32 %v301_v32, %v300_v20  ;;  %v295_v22 = vrot.slane %v294_v8, 2  ;;  %v360_v23 = vadd.f32 %v359_v26, %v220_v25  ;;  %v492_v26 = vld [vmem:[#allocation3 + $0x378] sm:$0xff] }
  0x50   :  { %1082 = vmatpush3.bf16.msra.mxu0 %v1081_v9  ;;  %v343_v59 = vrot.slane %v342_v37, 2  ;;  %v313_v30 = vrot.slane %v312_v2, 2  ;;  %v306_v28 = vadd.f32 %v305_v53, %v211_v50  ;;  %v353_v29 = vrot.slane %v219_v27, 4 }
  0x51   :  { %1084 = vmatprep.subr.bf16.mxu0 %v1083_v15  ;;  %v350_v33 = vadd.f32 %v349_v57, %v348_v1  ;;  %1110 = vmatpush3.bf16.msra.mxu1 %v1109_v7  ;;  %v303_v38 = vrot.slane %v302_v21, 1  ;;  %v296_v39 = vadd.f32 %v295_v22, %v294_v8  ;;  %v361_v9 = vrot.slane %v360_v23, 2 }
  0x52   :  { %v344_v3 = vadd.f32 %v343_v59, %v342_v37  ;;  %1112 = vmatprep.subr.bf16.mxu1 %v1111_v10  ;;  %v314_v45 = vadd.f32 %v313_v30, %v312_v2  ;;  %v307_v15 = vrot.slane %v306_v28, 2  ;;  %v354_v17 = vadd.f32 %v353_v29, %v219_v27  ;;  %v491_v37 = vld [vmem:[#allocation3 + $0x370] sm:$0xff] }
  0x53   :  { %v351_v44 = vrot.slane %v350_v33, 1  ;;  %v304_v34 = vadd.f32 %v303_v38, %v302_v21  ;;  %v297_v35 = vrot.slane %v296_v39, 1  ;;  %v362_v25 = vadd.f32 %v361_v9, %v360_v23  ;;  %v858_v21 = vld [vmem:[%s1594_s2] ss:$0 sm:$0xff]  ;;  %s1186_s2 = smov [#allocation6]  }
  0x54   :  { %1086 = vmatpush3.bf16.msra.mxu0 %v1085_v16  ;;  %v345_v7 = vrot.slane %v344_v3, 1  ;;  %v315_v52 = vrot.slane %v314_v45, 1  ;;  %v308_v40 = vadd.f32 %v307_v15, %v306_v28  ;;  %v355_v41 = vrot.slane %v354_v17, 2  ;;  %s849_s7 = sshll.u32 %s1186_s2, 4  ;;  %s850_s7 = int_to_ptr.vmem [resolvable:$true] %s849_s7 }
  0x55   :  { %1088 = vmatprep.subr.bf16.mxu0 %v1087_v24  ;;  %v352_v36 = vadd.f32 %v351_v44, %v350_v33  ;;  %1114 = vmatpush3.bf16.msra.mxu1 %v1113_v14  ;;  %v370_v46 = vmul.f32 0.083333336, %v304_v34  ;;  %v298_v47 = vadd.f32 %v297_v35, %v296_v39  ;;  %v363_v16 = vrot.slane %v362_v25, 1  ;;  %v489_v24 = vld [vmem:[#allocation3 + $0x360] sm:$0xff]  ;;  %v508_v14 = vld [vmem:[#allocation3 + $0x3f8] sm:$0xff]  ;;  %s1157_s8 = scalar_lea.vmem %s850_s7, 32  ;;  %p1162_p9 = scmp.lt.s32.totalorder %s850_s7, %s850_s7 }
  0x56   :  { %v346_v10 = vadd.f32 %v345_v7, %v344_v3  ;;  %1116 = vmatprep.subr.bf16.mxu1 %v1596_v60  ;;  %v316_v51 = vadd.f32 %v315_v52, %v314_v45  ;;  %v309_v63 = vrot.slane %v308_v40, 1  ;;  %v356_v0 = vadd.f32 %v355_v41, %v354_v17  ;;  %p1158_p8 = scmp.ne.s32.totalorder %s850_s7, %s1157_s8  ;;  %p1163_p10 = scmp.lt.s32.totalorder %s1157_s8, %s1157_s8 }
  0x57   :  { %v378_v31 = vmul.f32 0.083333336, %v352_v36  ;;  %v369_v20 = vmul.f32 0.083333336, %v298_v47  ;;  %v364_v48 = vadd.f32 %v363_v16, %v362_v25  ;;  %v1121_v19 = vpack.c.bf16 %v490_v56, %v489_v24 }
  0x58   :  { %1090 = vmatpush3.bf16.msra.mxu0 %v1597_v61  ;;  %v377_v58 = vmul.f32 0.083333336, %v346_v10  ;;  %v372_v1 = vmul.f32 0.083333336, %v316_v51  ;;  %v357_v62 = vrot.slane %v356_v0, 1  ;;  %v310_v32 = vadd.f32 %v309_v63, %v308_v40  ;;  %p1164_p11 = por %p1163_p10, %p1162_p9 }
  0x59   :  { %1092 = vmatprep.subr.bf16.mxu0 %v1598_v42  ;;  %v538_v49 = vsel %vm532_vm1, %v378_v31, %v370_v46  ;;  %1118 = vmatpush3.bf16.msra.mxu1 %v1599_v4  ;;  %v380_v50 = vmul.f32 0.083333336, %v364_v48  ;;  %v1123_v8 = vpack.c.bf16 %v508_v14, %v507_v43  ;;  %v1125_v55 = vpack.c.bf16 %v492_v26, %v491_v37 }
  0x5a   :  { %753 = vmatprep.mubr.f32.mxu0 %v538_v49  ;;  %1120 = vmatprep.subr.bf16.mxu1 %v1600_v11  ;;  %v537_v57 = vsel %vm532_vm1, %v377_v58, %v369_v20  ;;  %v358_v2 = vadd.f32 %v357_v62, %v356_v0  ;;  %v371_v27 = vmul.f32 0.083333336, %v310_v32  ;;  %p1165_p12 = pnand %p1164_p11, %p1158_p8 }
  0x5b   :  { %v540_v54 = vsel %vm532_vm1, %v380_v50, %v372_v1 }
  0x5c   :  { %1094 = vmatpush3.bf16.msra.mxu0 %v1601_v12  ;;  %823 = vmatprep.mubr.f32.mxu1 %v540_v54  ;;  %v379_v53 = vmul.f32 0.083333336, %v358_v2 }
  0x5d   :  { %1122 = vmatpush3.bf16.msra.mxu1 %v1121_v19 }
  0x5e   :  { %1124 = vmatprep.subr.bf16.mxu1 %v1123_v8  ;;  %v539_v5 = vsel %vm532_vm1, %v379_v53, %v371_v27 }
  0x5f   :  { %754 = vmatmul.mubr.f32.vlgmr.msra.gmra.mrb[2].mxu0 %v537_v57 }
  0x61   :  { %1126 = vmatpush3.bf16.msra.mxu1 %v1125_v55 }
  0x64   :  { %824 = vmatmul.mubr.f32.vlgmr.msra.gmra.mrb[2].mxu1 %v539_v5 }
 0x112   :  { %v891_v6 = vpop.f32.mrb[0].mxu0 }
 0x113   :  { %v892_v13 = vpop.f32.mrb[1].mxu0 }
 0x114   :  { %v893_v18 = vadd.f32 %v892_v13, %v891_v6 }
 0x116   :  { %v616_v22 = vadd.f32 %v893_v18, %v858_v21 }
 0x117   :  { %v926_v59 = vpop.f32.mrb[0].mxu1 }
 0x118   :  { %v927_v23 = vpop.f32.mrb[1].mxu1 }
 0x119   :  { %v928_v33 = vadd.f32 %v927_v23, %v926_v59 }
 0x11b   :  { %v686_v30 = vadd.f32 %v928_v33, %v616_v22 }
 0x132   :  { %v961_v28 = vpop.f32.mrb[2].mxu0 }
 0x133   :  { %v962_v29 = vpop.f32.mrb[3].mxu0 }
 0x134   :  { %v963_v38 = vadd.f32 %v962_v29, %v961_v28 }
 0x136   :  { %v756_v39 = vadd.f32 %v963_v38, %v686_v30 }
 0x137   :  { %v996_v3 = vpop.f32.mrb[2].mxu1 }
 0x138   :  { %v997_v9 = vpop.f32.mrb[3].mxu1 }
 0x139   :  { %v998_v44 = vadd.f32 %v997_v9, %v996_v3 }
 0x13b   :  { %v826_v45 = vadd.f32 %v998_v44, %v756_v39 }
 0x13d   :  { %v830_v15 = vsel %vm829_vm2, %v826_v45, -inf }
 0x13e   :  { %831 = vmax.xlane.f32.xlu0 %v830_v15 }
 0x1cb   :  { %v832_v17 = vpop.xlane.xlu0 %831 }
 0x1cc   :  { %v833_v34 = vsub.f32 %v826_v45, %v832_v17 }
 0x1ce   :  { %v834_v35 = vmul.f32 1.442695, %v833_v34 }
 0x1d0   :  { %1131 = vpow2.f32 %v834_v35 }
 0x1da   :  { %v1132_v7 = vpop.eup %1131 }
 0x1db   :  { %v836_v25 = vsel %vm829_vm2, %v1132_v7, 0.0 }
 0x1dc   :  { %837 = vadd.xlane.f32.xlu0 %v836_v25 }
 0x269   :  { %v838_v36 = vpop.xlane.xlu0 %837 }
 0x26a   :  { %1133 = vlog2.f32 %v838_v36 }
 0x274   :  { %v1134_v52 = vpop.eup %1133 }
 0x275   :  { %v840_v40 = vmul.f32 0.6931472, %v1134_v52 }
 0x277   :  { %v841_v41 = vsub.f32 %v833_v34, %v840_v40 }
 0x279   :  { %842 = vst [vmem:[#allocation6] sm:$0x3] %v841_v41 }
 0x27a   :  { %1168 = shalt.err (!%p1165_p12)
}
 0x27b   :  { %s1169_s11 = scalar_lea.hbm %s1595_s3, 32 }
 0x27c   :  { %p1170_p13 = scmp.ne.s32.totalorder %s1595_s3, %s1169_s11  ;;  %p1173_p0 = scmp.lt.u32.totalorder %s1169_s11, %s1595_s3 }
 0x27e   :  { %p1175_p1 = pnand %p1173_p0, %p1170_p13 }
 0x280   :  { %1178 = shalt.err (!%p1175_p1)
}
 0x281   :  { %852 = dma.vmem_to_hbm [thread:$0]  %s850_s7, 32, %s1595_s3, [#allocation5]  }
 0x282   :  { %1181 = dma.done.wait [#allocation5], 32  }
 0x283   :  { %1182 = vsyncadd [#allocation5], 4294967264 }
 0x284   :  { %856 = vsyncpa [#allocation4], 1 }
 0x285   :  { %857 = vsyncpa [#allocation5], 1 }

</bundles_post_ra>
